<compile_context>
chip_gen: v5e
topology: v5e:2x2
jax: 0.10.0
libtpu: 0.0.40
codegen_flags: <defaults>
</compile_context>

<pallas_src>
import jax
import jax.numpy as jnp
from jax.experimental import pallas as pl
from jax.experimental.pallas import tpu as pltpu

BN_EPS = 1e-5


def _make_linear_bn_relu_kernel(n_rows, eps):
    """Kernel factory closing over the true (un-padded) row count."""
    inv_n = 1.0 / float(n_rows)

    def kernel(x_ref, w_ref, gb_ref, o_ref, acc_ref, ss_ref):
        phase = pl.program_id(0)          # 0: stats pass, 1: normalize pass
        r = pl.program_id(1)              # row-tile index
        nr = pl.num_programs(1)

        # ---- Linear (bias omitted: it cancels exactly in y - mean) ----
        y = jnp.dot(x_ref[...], w_ref[...],
                    preferred_element_type=jnp.float32)      # (TM, C_pad), MXU

        @pl.when(phase == 0)
        def _stats():
            @pl.when(r == 0)
            def _init():
                acc_ref[...] = jnp.zeros_like(acc_ref)

            # Per-feature partial sum / sum-of-squares for this row tile.
            part = jnp.concatenate(
                [jnp.sum(y, axis=0, keepdims=True),
                 jnp.sum(y * y, axis=0, keepdims=True)], axis=0)
            acc_ref[...] += part

            @pl.when(r == nr - 1)
            def _finalize():
                mean = acc_ref[0:1, :] * inv_n
                var = acc_ref[1:2, :] * inv_n - mean * mean   # biased variance
                scale = gb_ref[0:1, :] * jax.lax.rsqrt(var + eps)   # EUP rsqrt
                shift = gb_ref[1:2, :] - mean * scale
                ss_ref[...] = jnp.concatenate([scale, shift], axis=0)

        @pl.when(phase == 1)
        def _normalize():
            # One FMA + ReLU per element, lane-dense unmasked store.
            o_ref[...] = jnp.maximum(
                y * ss_ref[0:1, :] + ss_ref[1:2, :], 0.0).astype(o_ref.dtype)

    return kernel


def linear_block_forward(x, w, gamma, beta, b=None, *, tile_rows=None):
    """Fused Linear -> BatchNorm1d(train) -> ReLU.

    x: (N, C_in) f32; w: (C_in, C_out) f32; gamma/beta: (C_out,) f32.
    `b` (the nn.Linear bias) is accepted for signature parity but ignored:
    it is mathematically cancelled by the BatchNorm mean subtraction.
    """
    del b  # cancels exactly in (y - mean); dead math + dead DMA if passed in.
    n, c_in = x.shape
    c_out = w.shape[1]

    # Pad the output feature dim to a lane-dense multiple of 128.
    c_pad = ((c_out + 127) // 128) * 128

    # Row tile: big enough to amortize per-step overhead, small enough to
    # keep (x tile + out tile) double-buffered well under the VMEM budget.
    if tile_rows is None:
        tile_rows = min(512, ((n + 7) // 8) * 8)
    tile_rows = max(8, ((tile_rows + 7) // 8) * 8)
    n_tiles = pl.cdiv(n, tile_rows)
    n_pad = n_tiles * tile_rows

    # Zero-padded rows contribute nothing to sum/sumsq (bias is dropped), so
    # BN statistics divided by the true N remain exact.
    x_p = jnp.zeros((n_pad, c_in), jnp.float32).at[:n, :].set(
        x.astype(jnp.float32))
    w_p = jnp.zeros((c_in, c_pad), jnp.float32).at[:, :c_out].set(
        w.astype(jnp.float32))

    # Coalesce gamma/beta into a single (2, C_pad) parameter slab (one DMA).
    gb = jnp.zeros((2, c_pad), jnp.float32)
    gb = gb.at[0, :c_out].set(gamma.reshape(-1).astype(jnp.float32))
    gb = gb.at[1, :c_out].set(beta.reshape(-1).astype(jnp.float32))

    kernel = _make_linear_bn_relu_kernel(n, BN_EPS)

    flops = 2 * (2 * n_pad * c_in * c_pad) + 8 * n_pad * c_pad
    bytes_accessed = 4 * (2 * n_pad * c_in + c_in * c_pad + 2 * c_pad
                          + n_pad * c_pad)

    out = pl.pallas_call(
        kernel,
        out_shape=jax.ShapeDtypeStruct((n_pad, c_pad), jnp.float32),
        grid=(2, n_tiles),
        in_specs=[
            pl.BlockSpec((tile_rows, c_in), lambda p, r: (r, 0)),   # x tile
            pl.BlockSpec((c_in, c_pad), lambda p, r: (0, 0)),       # W (resident)
            pl.BlockSpec((2, c_pad), lambda p, r: (0, 0)),          # gamma/beta
        ],
        # Phase 0 folds to block 0 => no stale writebacks; phase 1 writes each
        # row tile exactly once with its final content.
        out_specs=pl.BlockSpec((tile_rows, c_pad), lambda p, r: (r * p, 0)),
        scratch_shapes=[
            pltpu.VMEM((2, c_pad), jnp.float32),   # [sum; sumsq] accumulator
            pltpu.VMEM((2, c_pad), jnp.float32),   # [scale; shift]
        ],
        compiler_params=pltpu.CompilerParams(
            dimension_semantics=("arbitrary", "arbitrary")),
        cost_estimate=pl.CostEstimate(
            flops=flops, transcendentals=c_pad, bytes_accessed=bytes_accessed),
    )(x_p, w_p, gb)

    # Slice back to the module's (N, C_out).
    return out[:n, :c_out]


if __name__ == "__main__":
    # Shapes consistent with the module: the last projector layer sees x_pro
    # reshaped to (B*H*W, 64) with fc_out_channels=64. Use B=2, H=W=8 -> N=128.
    N, IN_CH, OUT_CH = 128, 64, 64

    key = jax.random.PRNGKey(0)
    kx, kw, kb, kg, kbt, kx2 = jax.random.split(key, 6)

    x = jax.random.normal(kx, (N, IN_CH), dtype=jnp.float32)

    # PyTorch-scale uniform init for the Linear layer; BN affine perturbed from
    # its (1, 0) init so the gamma/beta folding is actually exercised.
    bound = 1.0 / (IN_CH ** 0.5)
    w = jax.random.uniform(kw, (IN_CH, OUT_CH), jnp.float32, -bound, bound)
    b = jax.random.uniform(kb, (OUT_CH,), jnp.float32, -bound, bound)
    gamma = 1.0 + 0.1 * jax.random.normal(kg, (OUT_CH,), dtype=jnp.float32)
    beta = 0.1 * jax.random.normal(kbt, (OUT_CH,), dtype=jnp.float32)

    # Reference in plain JAX with PyTorch semantics (INCLUDING the linear bias,
    # to verify that dropping it inside the kernel is exact).
    def reference(x_, w_, b_, g_, bt_):
        y = x_ @ w_ + b_[None, :]
        mean = jnp.mean(y, axis=0, keepdims=True)
        var = jnp.mean((y - mean) ** 2, axis=0, keepdims=True)
        return jnp.maximum(
            (y - mean) / jnp.sqrt(var + BN_EPS) * g_[None, :] + bt_[None, :],
            0.0)

    # Check 1: single row tile (N = 128).
    out = linear_block_forward(x, w, gamma, beta, b)
    jax.block_until_ready(out)
    assert out.shape == (N, OUT_CH)
    ref = reference(x, w, b, gamma, beta)
    assert jnp.allclose(out, ref, atol=1e-4, rtol=1e-4), "mismatch vs reference"

    # Check 2: multi-tile grid path with row padding (N = 200, tile_rows = 64).
    N2 = 200
    x2 = jax.random.normal(kx2, (N2, IN_CH), dtype=jnp.float32)
    out2 = linear_block_forward(x2, w, gamma, beta, b, tile_rows=64)
    jax.block_until_ready(out2)
    assert out2.shape == (N2, OUT_CH)
    ref2 = reference(x2, w, b, gamma, beta)
    assert jnp.allclose(out2, ref2, atol=1e-4, rtol=1e-4), "mismatch (tiled)"

    print("KERNEL_OK")
</pallas_src>

<mosaic_0001>
module attributes {stable_mosaic.version = 11 : i64} {
  func.func @kernel(%arg0: i32, %arg1: i32, %arg2: memref<128x64xf32, #tpu.memory_space<vmem>>, %arg3: memref<64x128xf32, #tpu.memory_space<vmem>>, %arg4: memref<2x128xf32, #tpu.memory_space<vmem>>, %arg5: memref<128x128xf32, #tpu.memory_space<vmem>>, %arg6: memref<2x128xf32, #tpu.memory_space<vmem>>, %arg7: memref<2x128xf32, #tpu.memory_space<vmem>>) attributes {dimension_semantics = [#tpu.dimension_semantics<arbitrary>, #tpu.dimension_semantics<arbitrary>], iteration_bounds = array<i64: 2, 1>, scalar_prefetch = 0 : i64, scratch_operands = 2 : i64, tpu.core_type = #tpu.core_type<tc>, window_params = [{transform_indices = @transform_0, window_bounds = array<i64: 128, 64>}, {pipeline_mode = #tpu.pipeline_mode<synchronous>, transform_indices = @transform_1, window_bounds = array<i64: 64, 128>}, {pipeline_mode = #tpu.pipeline_mode<synchronous>, transform_indices = @transform_2, window_bounds = array<i64: 2, 128>}, {transform_indices = @transform_3, window_bounds = array<i64: 128, 128>}]} {
    %c0 = arith.constant 0 : index
    %c0_0 = arith.constant 0 : index
    %0 = vector.load %arg2[%c0, %c0_0] : memref<128x64xf32, #tpu.memory_space<vmem>>, vector<128x64xf32>
    %c0_1 = arith.constant 0 : index
    %c0_2 = arith.constant 0 : index
    %1 = vector.load %arg3[%c0_1, %c0_2] : memref<64x128xf32, #tpu.memory_space<vmem>>, vector<64x128xf32>
    %cst = arith.constant dense<0.000000e+00> : vector<128x128xf32>
    %2 = tpu.matmul %0, %1, %cst {dimension_numbers = #tpu.dot_dimension_numbers<[1], [0], [0], [1], [0, 0, 1, 1], [], []>} : vector<128x64xf32>, vector<64x128xf32>, vector<128x128xf32> -> vector<128x128xf32>
    %c0_i32 = arith.constant 0 : i32
    %3 = arith.cmpi eq, %arg0, %c0_i32 : i32
    %4 = arith.extui %3 : i1 to i32
    %c0_i32_3 = arith.constant 0 : i32
    %5 = arith.cmpi ne, %4, %c0_i32_3 : i32
    scf.if %5 {
      %c0_i32_5 = arith.constant 0 : i32
      %9 = arith.cmpi eq, %arg1, %c0_i32_5 : i32
      %10 = arith.extui %9 : i1 to i32
      %c0_i32_6 = arith.constant 0 : i32
      %11 = arith.cmpi ne, %10, %c0_i32_6 : i32
      scf.if %11 {
        %cst_15 = arith.constant 0.000000e+00 : f32
        %24 = vector.broadcast %cst_15 : f32 to vector<2x128xf32>
        %c0_16 = arith.constant 0 : index
        %c0_17 = arith.constant 0 : index
        %25 = vector.load %arg6[%c0_16, %c0_17] : memref<2x128xf32, #tpu.memory_space<vmem>>, vector<2x128xf32>
        tpu.vector_store %arg6[%c0_16, %c0_17], %24 {strides = array<i32>} : memref<2x128xf32, #tpu.memory_space<vmem>>, vector<2x128xf32>,
      } else {
      }
      %cst_7 = arith.constant dense<0.000000e+00> : vector<128xf32>
      %12 = vector.multi_reduction <add>, %2, %cst_7 [0] : vector<128x128xf32> to vector<128xf32>
      %13 = vector.shape_cast %12 : vector<128xf32> to vector<1x128xf32>
      %14 = arith.mulf %2, %2 : vector<128x128xf32>
      %cst_8 = arith.constant dense<0.000000e+00> : vector<128xf32>
      %15 = vector.multi_reduction <add>, %14, %cst_8 [0] : vector<128x128xf32> to vector<128xf32>
      %16 = vector.shape_cast %15 : vector<128xf32> to vector<1x128xf32>
      %17 = tpu.concatenate %13, %16 in 0 : vector<1x128xf32>, vector<1x128xf32> -> vector<2x128xf32>
      %c0_9 = arith.constant 0 : index
      %c0_10 = arith.constant 0 : index
      %18 = vector.load %arg6[%c0_9, %c0_10] : memref<2x128xf32, #tpu.memory_space<vmem>>, vector<2x128xf32>
      %19 = arith.addf %18, %17 : vector<2x128xf32>
      %c0_11 = arith.constant 0 : index
      %c0_12 = arith.constant 0 : index
      %20 = vector.load %arg6[%c0_11, %c0_12] : memref<2x128xf32, #tpu.memory_space<vmem>>, vector<2x128xf32>
      tpu.vector_store %arg6[%c0_11, %c0_12], %19 {strides = array<i32>} : memref<2x128xf32, #tpu.memory_space<vmem>>, vector<2x128xf32>,
      %c0_i32_13 = arith.constant 0 : i32
      %21 = arith.cmpi eq, %arg1, %c0_i32_13 : i32
      %22 = arith.extui %21 : i1 to i32
      %c0_i32_14 = arith.constant 0 : i32
      %23 = arith.cmpi ne, %22, %c0_i32_14 : i32
      scf.if %23 {
        %c0_15 = arith.constant 0 : index
        %c0_16 = arith.constant 0 : index
        %24 = vector.load %arg6[%c0_15, %c0_16] : memref<2x128xf32, #tpu.memory_space<vmem>>, vector<1x128xf32>
        %cst_17 = arith.constant 7.812500e-03 : f32
        %25 = vector.broadcast %cst_17 : f32 to vector<1x128xf32>
        %26 = arith.mulf %24, %25 : vector<1x128xf32>
        %c1 = arith.constant 1 : index
        %c0_18 = arith.constant 0 : index
        %27 = vector.load %arg6[%c1, %c0_18] : memref<2x128xf32, #tpu.memory_space<vmem>>, vector<1x128xf32>
        %cst_19 = arith.constant 7.812500e-03 : f32
        %28 = vector.broadcast %cst_19 : f32 to vector<1x128xf32>
        %29 = arith.mulf %27, %28 : vector<1x128xf32>
        %30 = arith.mulf %26, %26 : vector<1x128xf32>
        %31 = arith.subf %29, %30 : vector<1x128xf32>
        %c0_20 = arith.constant 0 : index
        %c0_21 = arith.constant 0 : index
        %32 = vector.load %arg4[%c0_20, %c0_21] : memref<2x128xf32, #tpu.memory_space<vmem>>, vector<1x128xf32>
        %cst_22 = arith.constant 9.99999974E-6 : f32
        %33 = vector.broadcast %cst_22 : f32 to vector<1x128xf32>
        %34 = arith.addf %31, %33 : vector<1x128xf32>
        %35 = math.rsqrt %34 : vector<1x128xf32>
        %36 = arith.mulf %32, %35 : vector<1x128xf32>
        %c1_23 = arith.constant 1 : index
        %c0_24 = arith.constant 0 : index
        %37 = vector.load %arg4[%c1_23, %c0_24] : memref<2x128xf32, #tpu.memory_space<vmem>>, vector<1x128xf32>
        %38 = arith.mulf %26, %36 : vector<1x128xf32>
        %39 = arith.subf %37, %38 : vector<1x128xf32>
        %40 = tpu.concatenate %36, %39 in 0 : vector<1x128xf32>, vector<1x128xf32> -> vector<2x128xf32>
        %c0_25 = arith.constant 0 : index
        %c0_26 = arith.constant 0 : index
        %41 = vector.load %arg7[%c0_25, %c0_26] : memref<2x128xf32, #tpu.memory_space<vmem>>, vector<2x128xf32>
        tpu.vector_store %arg7[%c0_25, %c0_26], %40 {strides = array<i32>} : memref<2x128xf32, #tpu.memory_space<vmem>>, vector<2x128xf32>,
      } else {
      }
    } else {
    }
    %c1_i32 = arith.constant 1 : i32
    %6 = arith.cmpi eq, %arg0, %c1_i32 : i32
    %7 = arith.extui %6 : i1 to i32
    %c0_i32_4 = arith.constant 0 : i32
    %8 = arith.cmpi ne, %7, %c0_i32_4 : i32
    scf.if %8 {
      %c0_5 = arith.constant 0 : index
      %c0_6 = arith.constant 0 : index
      %9 = vector.load %arg7[%c0_5, %c0_6] : memref<2x128xf32, #tpu.memory_space<vmem>>, vector<1x128xf32>
      %10 = vector.broadcast %9 : vector<1x128xf32> to vector<128x128xf32>
      %11 = arith.mulf %2, %10 : vector<128x128xf32>
      %c1 = arith.constant 1 : index
      %c0_7 = arith.constant 0 : index
      %12 = vector.load %arg7[%c1, %c0_7] : memref<2x128xf32, #tpu.memory_space<vmem>>, vector<1x128xf32>
      %13 = vector.broadcast %12 : vector<1x128xf32> to vector<128x128xf32>
      %14 = arith.addf %11, %13 : vector<128x128xf32>
      %cst_8 = arith.constant 0.000000e+00 : f32
      %15 = vector.broadcast %cst_8 : f32 to vector<128x128xf32>
      %16 = arith.maximumf %14, %15 : vector<128x128xf32>
      %c0_9 = arith.constant 0 : index
      %c0_10 = arith.constant 0 : index
      %17 = vector.load %arg5[%c0_9, %c0_10] : memref<128x128xf32, #tpu.memory_space<vmem>>, vector<128x128xf32>
      tpu.vector_store %arg5[%c0_9, %c0_10], %16 {strides = array<i32>} : memref<128x128xf32, #tpu.memory_space<vmem>>, vector<128x128xf32>,
    } else {
    }
    return
  }
  func.func @transform_0(%arg0: i32, %arg1: i32) -> (i32, i32) {
    %c0_i32 = arith.constant 0 : i32
    %c0_i32_0 = arith.constant 0 : i32
    return %arg1, %c0_i32 : i32, i32
  }
  func.func @transform_1(%arg0: i32, %arg1: i32) -> (i32, i32) {
    %c0_i32 = arith.constant 0 : i32
    %c0_i32_0 = arith.constant 0 : i32
    %c0_i32_1 = arith.constant 0 : i32
    return %c0_i32, %c0_i32_0 : i32, i32
  }
  func.func @transform_2(%arg0: i32, %arg1: i32) -> (i32, i32) {
    %c0_i32 = arith.constant 0 : i32
    %c0_i32_0 = arith.constant 0 : i32
    %c0_i32_1 = arith.constant 0 : i32
    return %c0_i32, %c0_i32_0 : i32, i32
  }
  func.func @transform_3(%arg0: i32, %arg1: i32) -> (i32, i32) {
    %0 = arith.muli %arg1, %arg0 : i32
    %c0_i32 = arith.constant 0 : i32
    %c0_i32_0 = arith.constant 0 : i32
    return %0, %c0_i32 : i32, i32
  }
}

</mosaic_0001>

<bundles_post_ra>
// kernel: tpu_custom_call.1
= control target key start
LH: loop header
LB: loop body
LE: loop exit
PB: predicated region body
PF: predicated region fallthrough
CT: control target
= control target key end

     0   :  { %8 = vsyncpa [#allocation5], 0  ;;  %s996_s0 = inlined_call_operand.vmem [shape: f32[128,64], index: 0, kind: input, shape index: {}]   ;;  %s997_s1 = inlined_call_operand.vmem [shape: f32[64,128], index: 1, kind: input, shape index: {}]   ;;  %s998_s2 = inlined_call_operand.vmem [shape: f32[2,128], index: 2, kind: input, shape index: {}]   ;;  %s999_s3 = inlined_call_operand.hbm [shape: f32[128,128], index: 3, kind: output, shape index: {}]  }
   0x1   :  { %10 = vsyncpa [#allocation5 + $0x1], 0  ;;  %s763_s12 = smov 0   ;;  %s765_s13 = smov 0  }
   0x2   :  { %s767_s14 = smov 0  }
   0x3 LB: > { %s589_s15 = sadd.s32 4294967295, %s737_s14   ;;  %s590_s16 = sadd.s32 4294967294, %s737_s14   ;;  %s737_s14 = sphi %s767_s14, %s16_s14   ;;  %s733_s13 = sphi %s765_s13, %s1001_s13   ;;  %s729_s12 = sphi %s763_s12, %s1000_s12  }
   0x4   : > { %s28_s17 = sadd.s32 1, %s733_s13  ;;  %p593_p0 = scmp.ge.s32.totalorder %s737_s14, 1 }
   0x5   : > { %p30_p1 = scmp.ge.s32.totalorder %s28_s17, 2  ;;  %p155_p2 = scmp.lt.s32.totalorder %s737_s14, 3 }
   0x7   : > { %s1003_s17 = smov (%p30_p1, %s28_s17), 0  ;;  %p156_p3 = pnand %p593_p0, %p155_p2 }
   0x8   : > { %p610_p4 = scmp.ne.s32.totalorder (!%p156_p3), %s729_s12, 0 }
   0x9   : > { %159 = sbr.rel (%p156_p3) target bundleno = 311 (0x137), region = 32 }
   0xe   : > { %v210_v0 = vld [vmem:[%s997_s1 + $0x38] sm:$0xff]  ;;  %v209_v1 = vld [vmem:[%s997_s1 + $0x30] sm:$0xff]  ;;  %v208_v2 = vld [vmem:[%s997_s1 + $0x28] sm:$0xff]  ;;  %vm211_vm0 = vcmask 523264  }
   0xf   : > { %617 = vmatpush.msra.mxu2 %v210_v0  ;;  %618 = vmatpush.msra.mxu3 %v210_v0  ;;  %v207_v3 = vld [vmem:[%s997_s1 + $0x20] sm:$0xff]  ;;  %v206_v4 = vld [vmem:[%s997_s1 + $0x18] sm:$0xff]  ;;  %v205_v5 = vld [vmem:[%s997_s1 + $0x10] sm:$0xff] }
  0x10   : > { %268 = vmatpush.msra.mxu0 %v210_v0  ;;  %616 = vmatpush.msra.mxu1 %v210_v0  ;;  %v204_v6 = vld [vmem:[%s997_s1 + $0x8] sm:$0xff]  ;;  %v203_v7 = vld [vmem:[%s997_s1] sm:$0xff]  ;;  %v197_v16 = vld [vmem:[%s996_s0 + $0x50] sm:$0xff] }
  0x11   : > { %620 = vmatpush.msra.mxu2 %v209_v1  ;;  %621 = vmatpush.msra.mxu3 %v209_v1  ;;  %v195_v8 = vld [vmem:[%s996_s0 + $0x40] sm:$0xff]  ;;  %v196_v12 = vld [vmem:[%s996_s0 + $0x48] sm:$0xff]  ;;  %v201_v17 = vld [vmem:[%s996_s0 + $0x70] sm:$0xff] }
  0x12   : > { %269 = vmatpush.msra.mxu0 %v209_v1  ;;  %619 = vmatpush.msra.mxu1 %v209_v1  ;;  %v199_v9 = vld [vmem:[%s996_s0 + $0x60] sm:$0xff]  ;;  %v200_v13 = vld [vmem:[%s996_s0 + $0x68] sm:$0xff]  ;;  %v189_v18 = vld [vmem:[%s996_s0 + $0x10] sm:$0xff] }
  0x13   : > { %623 = vmatpush.msra.mxu2 %v208_v2  ;;  %624 = vmatpush.msra.mxu3 %v208_v2  ;;  %v187_v10 = vld [vmem:[%s996_s0] sm:$0xff]  ;;  %v188_v14 = vld [vmem:[%s996_s0 + $0x8] sm:$0xff]  ;;  %v193_v19 = vld [vmem:[%s996_s0 + $0x30] sm:$0xff] }
  0x14   : > { %270 = vmatpush.msra.mxu0 %v208_v2  ;;  %622 = vmatpush.msra.mxu1 %v208_v2  ;;  %v191_v11 = vld [vmem:[%s996_s0 + $0x20] sm:$0xff]  ;;  %v192_v15 = vld [vmem:[%s996_s0 + $0x28] sm:$0xff]  ;;  %v198_v20 = vld [vmem:[%s996_s0 + $0x58] sm:$0xff] }
  0x15   : > { %626 = vmatpush.msra.mxu2 %v207_v3  ;;  %627 = vmatpush.msra.mxu3 %v207_v3  ;;  %v202_v21 = vld [vmem:[%s996_s0 + $0x78] sm:$0xff] }
  0x16   : > { %271 = vmatpush.msra.mxu0 %v207_v3  ;;  %625 = vmatpush.msra.mxu1 %v207_v3  ;;  %v190_v22 = vld [vmem:[%s996_s0 + $0x18] sm:$0xff] }
  0x17   : > { %629 = vmatpush.msra.mxu2 %v206_v4  ;;  %630 = vmatpush.msra.mxu3 %v206_v4  ;;  %v194_v23 = vld [vmem:[%s996_s0 + $0x38] sm:$0xff] }
  0x18   : > { %272 = vmatpush.msra.mxu0 %v206_v4  ;;  %628 = vmatpush.msra.mxu1 %v206_v4 }
  0x19   : > { %632 = vmatpush.msra.mxu2 %v205_v5  ;;  %633 = vmatpush.msra.mxu3 %v205_v5 }
  0x1a   : > { %273 = vmatpush.msra.mxu0 %v205_v5  ;;  %631 = vmatpush.msra.mxu1 %v205_v5 }
  0x1b   : > { %635 = vmatpush.msra.mxu2 %v204_v6  ;;  %636 = vmatpush.msra.mxu3 %v204_v6 }
  0x1c   : > { %274 = vmatpush.msra.mxu0 %v204_v6  ;;  %634 = vmatpush.msra.mxu1 %v204_v6 }
  0x1d   : > { %638 = vmatpush.msra.mxu2 %v203_v7  ;;  %639 = vmatpush.msra.mxu3 %v203_v7 }
  0x1e   : > { %602 = vmatmul.msk.f32.vlgmr.msra.gmra.mxu2 %vm211_vm0, %v195_v8  ;;  %606 = vmatmul.msk.f32.vlgmr.msra.gmra.mxu3 %vm211_vm0, %v199_v9 }
  0x1f   : > { %275 = vmatpush.msra.mxu0 %v203_v7  ;;  %637 = vmatpush.msra.mxu1 %v203_v7 }
  0x20   : > { %594 = vmatmul.msk.f32.vlgmr.msra.gmra.mxu0 %vm211_vm0, %v187_v10  ;;  %598 = vmatmul.msk.f32.vlgmr.msra.gmra.mxu1 %vm211_vm0, %v191_v11 }
  0x26   : > { %603 = vmatmul.msk.f32.gmra.mxu2 %vm211_vm0, %v196_v12  ;;  %607 = vmatmul.msk.f32.gmra.mxu3 %vm211_vm0, %v200_v13 }
  0x28   : > { %595 = vmatmul.msk.f32.gmra.mxu0 %vm211_vm0, %v188_v14  ;;  %599 = vmatmul.msk.f32.gmra.mxu1 %vm211_vm0, %v192_v15 }
  0x2e   : > { %604 = vmatmul.msk.f32.gmra.mxu2 %vm211_vm0, %v197_v16  ;;  %608 = vmatmul.msk.f32.gmra.mxu3 %vm211_vm0, %v201_v17 }
  0x30   : > { %596 = vmatmul.msk.f32.gmra.mxu0 %vm211_vm0, %v189_v18  ;;  %600 = vmatmul.msk.f32.gmra.mxu1 %vm211_vm0, %v193_v19 }
  0x36   : > { %605 = vmatmul.msk.f32.gmra.mxu2 %vm211_vm0, %v198_v20  ;;  %609 = vmatmul.msk.f32.gmra.mxu3 %vm211_vm0, %v202_v21 }
  0x38   : > { %597 = vmatmul.msk.f32.gmra.mxu0 %vm211_vm0, %v190_v22  ;;  %601 = vmatmul.msk.f32.gmra.mxu1 %vm211_vm0, %v194_v23 }
  0x9d   : > { %v873_v24 = vpop.f32.mrf.mxu0  ;;  %v875_v25 = vpop.f32.mrf.mxu1 }
  0xa1   : > { %v877_v26 = vpop.f32.mrf.mxu2  ;;  %v879_v27 = vpop.f32.mrf.mxu3 }
  0xa5   : > { %v881_v28 = vpop.f32.mrf.mxu0  ;;  %v883_v29 = vpop.f32.mrf.mxu1 }
  0xa9   : > { %v885_v30 = vpop.f32.mrf.mxu2  ;;  %v887_v31 = vpop.f32.mrf.mxu3 }
  0xad   : > { %v889_v32 = vpop.f32.mrf.mxu0  ;;  %v891_v33 = vpop.f32.mrf.mxu1 }
  0xb1   : > { %v893_v34 = vpop.f32.mrf.mxu2  ;;  %v895_v35 = vpop.f32.mrf.mxu3 }
  0xb5   : > { %v897_v36 = vpop.f32.mrf.mxu0  ;;  %v899_v37 = vpop.f32.mrf.mxu1  ;;  %328 = sbr.rel (%p610_p4) target bundleno = 277 (0x115), region = 36 }
  0xb9   : > { %v901_v38 = vpop.f32.mrf.mxu2  ;;  %v903_v39 = vpop.f32.mrf.mxu3 }
  0xba   : > { %v334_v40 = vadd.f32 %v881_v28, %v873_v24  ;;  %v739_v41 = vmov 0.0   ;;  %v355_v42 = vmul.f32 %v873_v24, %v873_v24  ;;  %v356_v43 = vmul.f32 %v881_v28, %v881_v28 }
  0xbb   : > { %333 = vst [vmem:[#allocation2] sm:$0x3] %v739_v41  ;;  %v357_v45 = vmul.f32 %v889_v32, %v889_v32  ;;  %v358_v47 = vmul.f32 %v897_v36, %v897_v36  ;;  %v359_v50 = vmul.f32 %v875_v25, %v875_v25  ;;  %v360_v53 = vmul.f32 %v883_v29, %v883_v29 }
  0xbc   : > { %v335_v44 = vadd.f32 %v334_v40, %v889_v32  ;;  %v371_v48 = vadd.f32 %v356_v43, %v355_v42  ;;  %v361_v56 = vmul.f32 %v891_v33, %v891_v33  ;;  %v362_v59 = vmul.f32 %v899_v37, %v899_v37 }
  0xbd   : > { %v363_v62 = vmul.f32 %v877_v26, %v877_v26  ;;  %v364_v1 = vmul.f32 %v885_v30, %v885_v30  ;;  %v365_v4 = vmul.f32 %v893_v34, %v893_v34  ;;  %v366_v7 = vmul.f32 %v901_v38, %v901_v38 }
  0xbe   : > { %v336_v46 = vadd.f32 %v335_v44, %v897_v36  ;;  %v372_v51 = vadd.f32 %v371_v48, %v357_v45  ;;  %v367_v10 = vmul.f32 %v879_v27, %v879_v27  ;;  %v368_v13 = vmul.f32 %v887_v31, %v887_v31 }
  0xbf   : > { %v369_v16 = vmul.f32 %v895_v35, %v895_v35  ;;  %v370_v19 = vmul.f32 %v903_v39, %v903_v39  ;;  %vm392_vm1 = vcmask 1040384  }
  0xc0   : > { %v337_v49 = vadd.f32 %v336_v46, %v875_v25  ;;  %v373_v54 = vadd.f32 %v372_v51, %v358_v47 }
  0xc2   : > { %v338_v52 = vadd.f32 %v337_v49, %v883_v29  ;;  %v374_v57 = vadd.f32 %v373_v54, %v359_v50  ;;  %v394_v51 = vld [vmem:[#allocation2] sm:$0x3] }
  0xc4   : > { %v339_v55 = vadd.f32 %v338_v52, %v891_v33  ;;  %v375_v60 = vadd.f32 %v374_v57, %v360_v53 }
  0xc6   : > { %v340_v58 = vadd.f32 %v339_v55, %v899_v37  ;;  %v376_v63 = vadd.f32 %v375_v60, %v361_v56 }
  0xc8   : > { %v341_v61 = vadd.f32 %v340_v58, %v877_v26  ;;  %v377_v2 = vadd.f32 %v376_v63, %v362_v59 }
  0xca   : > { %v342_v0 = vadd.f32 %v341_v61, %v885_v30  ;;  %v378_v5 = vadd.f32 %v377_v2, %v363_v62  ;;  %v406_v2 = vld [vmem:[%s998_s2] sm:$0x1] }
  0xcc   : > { %v343_v3 = vadd.f32 %v342_v0, %v893_v34  ;;  %v379_v8 = vadd.f32 %v378_v5, %v364_v1 }
  0xce   : > { %v344_v6 = vadd.f32 %v343_v3, %v901_v38  ;;  %v380_v11 = vadd.f32 %v379_v8, %v365_v4 }
  0xd0   : > { %v345_v9 = vadd.f32 %v344_v6, %v879_v27  ;;  %v381_v14 = vadd.f32 %v380_v11, %v366_v7  ;;  %v419_v6 = vld [vmem:[%s998_s2 + $0x1] sm:$0x1] }
  0xd2   : > { %v346_v12 = vadd.f32 %v345_v9, %v887_v31  ;;  %v382_v17 = vadd.f32 %v381_v14, %v367_v10 }
  0xd4   : > { %v347_v15 = vadd.f32 %v346_v12, %v895_v35  ;;  %v383_v20 = vadd.f32 %v382_v17, %v368_v13 }
  0xd6   : > { %v348_v18 = vadd.f32 %v347_v15, %v903_v39  ;;  %v384_v22 = vadd.f32 %v383_v20, %v369_v16 }
  0xd8   : > { %v349_v21 = vrot.slane %v348_v18, 4  ;;  %v385_v40 = vadd.f32 %v384_v22, %v370_v19 }
  0xda   : > { %v350_v23 = vadd.f32 %v349_v21, %v348_v18  ;;  %v386_v42 = vrot.slane %v385_v40, 4 }
  0xdc   : > { %v351_v41 = vrot.slane %v350_v23, 2  ;;  %v387_v44 = vadd.f32 %v386_v42, %v385_v40 }
  0xde   : > { %v352_v43 = vadd.f32 %v351_v41, %v350_v23  ;;  %v388_v46 = vrot.slane %v387_v44, 2 }
  0xe0   : > { %v353_v45 = vrot.slane %v352_v43, 1  ;;  %v389_v47 = vadd.f32 %v388_v46, %v387_v44 }
  0xe2   : > { %v354_v48 = vadd.f32 %v353_v45, %v352_v43  ;;  %v390_v49 = vrot.slane %v389_v47, 1 }
  0xe4   : > { %v391_v50 = vadd.f32 %v390_v49, %v389_v47 }
  0xe6   : > { %v393_v52 = vsel %vm392_vm1, %v354_v48, %v391_v50 }
  0xe7   : > { %v395_v53 = vadd.f32 %v394_v51, %v393_v52 }
  0xe9   : > { %396 = vst [vmem:[#allocation2] sm:$0x3] %v395_v53 }
  0xf0   : > { %v400_v54 = vld [vmem:[#allocation2] sm:$0x1]  ;;  %v402_v55 = vld [vmem:[#allocation2 + $0x1] sm:$0x1] }
  0xf1   : > { %v401_v56 = vmul.f32 0.0078125, %v400_v54  ;;  %v403_v57 = vmul.f32 0.0078125, %v402_v55 }
  0xf3   : > { %v404_v58 = vmul.f32 %v401_v56, %v401_v56 }
  0xf5   : > { %v405_v59 = vsub.f32 %v403_v57, %v404_v58 }
  0xf7   : > { %v407_v60 = vadd.f32 1e-05, %v405_v59 }
  0xf9   : > { %679 = vrsqrt.f32 %v407_v60  ;;  %vm414_vm3 = vweird.f32 %v407_v60 }
  0xff   : > { %v680_v61 = vpop.eup %679 }
 0x100   : > { %v409_v62 = vmul.f32 %v680_v61, %v407_v60  ;;  %vm415_vm2 = vweird.f32 %v680_v61 }
 0x101   : > { %vm416_vm4 = vmor %vm414_vm3, %vm415_vm2 }
 0x102   : > { %v410_v63 = vmul.f32 %v680_v61, %v409_v62 }
 0x104   : > { %v411_v0 = vmul.f32 0.5, %v410_v63 }
 0x106   : > { %v412_v1 = vsub.f32 1.5, %v411_v0 }
 0x108   : > { %v413_v3 = vmul.f32 %v680_v61, %v412_v1 }
 0x10a   : > { %v417_v4 = vsel %vm416_vm4, %v680_v61, %v413_v3 }
 0x10b   : > { %v418_v5 = vmul.f32 %v417_v4, %v406_v2 }
 0x10d   : > { %v420_v7 = vmul.f32 %v418_v5, %v401_v56 }
 0x10f   : > { %v421_v8 = vsub.f32 %v419_v6, %v420_v7 }
 0x111   : > { %v423_v9 = vrot.slane %v421_v8, 7 }
 0x113   : > { %v425_v10 = vsel %vm392_vm1, %v418_v5, %v423_v9 }
 0x114   : > { %426 = vst [vmem:[#allocation3] sm:$0x3] %v425_v10 }
 0x115 PF: > { %p611_p5 = scmp.ne.s32.totalorder %s729_s12, 1 }
 0x117   : > { %430 = sbr.rel (%p611_p5) target bundleno = 307 (0x133), region = 48 }
 0x11c   : > { %v681_v11 = vld [vmem:[#allocation3] ss:$0 sm:$0xff]  ;;  %v682_v12 = vld [vmem:[#allocation3 + $0x1] ss:$0 sm:$0xff] }
 0x11d   : > { %v433_v13 = vmul.f32 %v681_v11, %v873_v24  ;;  %v434_v14 = vmul.f32 %v681_v11, %v881_v28  ;;  %v435_v15 = vmul.f32 %v681_v11, %v889_v32  ;;  %v436_v16 = vmul.f32 %v681_v11, %v897_v36 }
 0x11e   : > { %v437_v17 = vmul.f32 %v681_v11, %v875_v25  ;;  %v438_v18 = vmul.f32 %v681_v11, %v883_v29  ;;  %v439_v19 = vmul.f32 %v681_v11, %v891_v33  ;;  %v440_v20 = vmul.f32 %v681_v11, %v899_v37 }
 0x11f   : > { %v451_v21 = vadd.f32 %v682_v12, %v433_v13  ;;  %v452_v22 = vadd.f32 %v682_v12, %v434_v14  ;;  %v453_v23 = vadd.f32 %v682_v12, %v435_v15  ;;  %v454_v40 = vadd.f32 %v682_v12, %v436_v16 }
 0x120   : > { %v455_v41 = vadd.f32 %v682_v12, %v437_v17  ;;  %v456_v24 = vadd.f32 %v682_v12, %v438_v18  ;;  %v457_v42 = vadd.f32 %v682_v12, %v439_v19  ;;  %v458_v45 = vadd.f32 %v682_v12, %v440_v20 }
 0x121   : > { %v467_v28 = vmax.f32 %v451_v21, 0.0  ;;  %v468_v43 = vmax.f32 %v452_v22, 0.0  ;;  %v469_v32 = vmax.f32 %v453_v23, 0.0  ;;  %v470_v44 = vmax.f32 %v454_v40, 0.0 }
 0x122   : > { %v471_v36 = vmax.f32 %v455_v41, 0.0  ;;  %v441_v25 = vmul.f32 %v681_v11, %v877_v26  ;;  %v442_v29 = vmul.f32 %v681_v11, %v885_v30  ;;  %v443_v33 = vmul.f32 %v681_v11, %v893_v34 }
 0x123   : > { %483 = vst [vmem:[#allocation4] sm:$0xff] %v467_v28  ;;  %v444_v37 = vmul.f32 %v681_v11, %v901_v38  ;;  %v472_v46 = vmax.f32 %v456_v24, 0.0  ;;  %v473_v47 = vmax.f32 %v457_v42, 0.0  ;;  %v445_v48 = vmul.f32 %v681_v11, %v879_v27 }
 0x124   : > { %484 = vst [vmem:[#allocation4 + $0x8] sm:$0xff] %v468_v43  ;;  %v446_v49 = vmul.f32 %v681_v11, %v887_v31  ;;  %v459_v50 = vadd.f32 %v682_v12, %v441_v25  ;;  %v460_v51 = vadd.f32 %v682_v12, %v442_v29  ;;  %v461_v52 = vadd.f32 %v682_v12, %v443_v33 }
 0x125   : > { %485 = vst [vmem:[#allocation4 + $0x10] sm:$0xff] %v469_v32  ;;  %v447_v53 = vmul.f32 %v681_v11, %v895_v35  ;;  %v474_v26 = vmax.f32 %v458_v45, 0.0  ;;  %v462_v30 = vadd.f32 %v682_v12, %v444_v37  ;;  %v448_v34 = vmul.f32 %v681_v11, %v903_v39 }
 0x126   : > { %486 = vst [vmem:[#allocation4 + $0x18] sm:$0xff] %v470_v44  ;;  %v475_v38 = vmax.f32 %v459_v50, 0.0  ;;  %v463_v54 = vadd.f32 %v682_v12, %v445_v48  ;;  %v476_v55 = vmax.f32 %v460_v51, 0.0  ;;  %v464_v56 = vadd.f32 %v682_v12, %v446_v49 }
 0x127   : > { %487 = vst [vmem:[#allocation4 + $0x20] sm:$0xff] %v471_v36  ;;  %v477_v27 = vmax.f32 %v461_v52, 0.0  ;;  %v465_v31 = vadd.f32 %v682_v12, %v447_v53  ;;  %v478_v57 = vmax.f32 %v462_v30, 0.0  ;;  %v466_v58 = vadd.f32 %v682_v12, %v448_v34 }
 0x128   : > { %488 = vst [vmem:[#allocation4 + $0x28] sm:$0xff] %v472_v46  ;;  %v479_v59 = vmax.f32 %v463_v54, 0.0  ;;  %v480_v35 = vmax.f32 %v464_v56, 0.0 }
 0x129   : > { %489 = vst [vmem:[#allocation4 + $0x30] sm:$0xff] %v473_v47  ;;  %v481_v60 = vmax.f32 %v465_v31, 0.0  ;;  %v482_v39 = vmax.f32 %v466_v58, 0.0 }
 0x12a   : > { %490 = vst [vmem:[#allocation4 + $0x38] sm:$0xff] %v474_v26 }
 0x12b   : > { %491 = vst [vmem:[#allocation4 + $0x40] sm:$0xff] %v475_v38 }
 0x12c   : > { %492 = vst [vmem:[#allocation4 + $0x48] sm:$0xff] %v476_v55 }
 0x12d   : > { %493 = vst [vmem:[#allocation4 + $0x50] sm:$0xff] %v477_v27 }
 0x12e   : > { %494 = vst [vmem:[#allocation4 + $0x58] sm:$0xff] %v478_v57 }
 0x12f   : > { %495 = vst [vmem:[#allocation4 + $0x60] sm:$0xff] %v479_v59 }
 0x130   : > { %496 = vst [vmem:[#allocation4 + $0x68] sm:$0xff] %v480_v35 }
 0x131   : > { %497 = vst [vmem:[#allocation4 + $0x70] sm:$0xff] %v481_v60 }
 0x132   : > { %498 = vst [vmem:[#allocation4 + $0x78] sm:$0xff] %v482_v39 }
 0x133 PF: > { %p648_p6 = scmp.eq.s32.totalorder %s589_s15, 1  ;;  %s515_s29 = sshll.u32 %s999_s3, 4  ;;  %s516_s29 = int_to_ptr.hbm [resolvable:$true] %s515_s29 }
 0x134   : > { %s740_s30 = smov [#allocation4]   ;;  %s741_s5 = smov 128  }
 0x135   : > { %s513_s4 = sshll.u32 %s740_s30, 4  ;;  %s742_s6 = smov 8   ;;  %s514_s4 = int_to_ptr.vmem [resolvable:$true] %s513_s4 }
 0x136   : > { %641 = dma.vmem_to_hbm [thread:$0]  (%p648_p6), %s514_s4, 2048, %s516_s29, [#allocation5], %s741_s5, %s741_s5, %s742_s6  }
 0x137 PF: > { %p649_p7 = scmp.ge.s32.totalorder %s737_s14, 2  ;;  %p650_p8 = scmp.eq.s32.totalorder %s590_s16, 1 }
 0x139   : > { %p645_p9 = pnand %p650_p8, %p649_p7 }
 0x13b   : > { %p646_p10 = pneg %p645_p9 }
 0x13d   : > { %724 = dma.done.wait (%p646_p10), [#allocation5], 2048  }
 0x13e   : > { %726 = vsyncadd (%p646_p10), [#allocation5], 4294965248  ;;  %s16_s14 = sadd.s32 1, %s737_s14   ;;  %s1000_s12 = smov %s733_s13 }
 0x13f   : > { %p13_p11 = scmp.ge.s32.totalorder %s16_s14, 4   ;;  %s1001_s13 = smov %s1003_s17 }
 0x141   :  { %15 = sbr.rel (!%p13_p11) target bundleno = 3 (0x3), region = 83 }
 0x146   :  { %537 = vsyncpa [#allocation5], 1 }
 0x147   :  { %539 = vsyncpa [#allocation5 + $0x1], 1 }

</bundles_post_ra>
